<compile_context>
chip_gen: v7x
topology: tpu7x:2x2x1
jax: 0.10.0
libtpu: 0.0.40
codegen_flags: <defaults>
</compile_context>

<pallas_src>
import functools

import jax
import jax.numpy as jnp
from jax.experimental import pallas as pl
from jax.experimental.pallas import tpu as pltpu


def _vmem_capacity_bytes():
    try:
        return int(pltpu.get_tpu_info().vmem_capacity_bytes)
    except Exception:
        return 64 << 20  # conservative fallback (v7x per-core VMEM)


def _stm_kernel(x_ref, w_ref, o_ref, *, compute_dtype):
    # x_ref: (TB, 1, TG, D)  rows of one head (TB batch entries x TG group rows)
    # w_ref: (1, D, D)       this head's weight, nn.Linear (out, in) layout
    # o_ref: (TB, 1, TG, D)
    tb, _, tg, d = x_ref.shape
    xv = x_ref[...].reshape(tb * tg, d)   # merge leading dims -> fat MXU M dim
    wv = w_ref[0]
    if compute_dtype is not None:
        xv = xv.astype(compute_dtype)
        wv = wv.astype(compute_dtype)
    # y = x @ W^T : contract x's last dim with W's last (in_features) dim.
    y = jax.lax.dot_general(
        xv,
        wv,
        dimension_numbers=(((1,), (1,)), ((), ())),
        preferred_element_type=jnp.float32,
    )
    o_ref[...] = y.reshape(tb, 1, tg, d).astype(o_ref.dtype)


@functools.partial(
    jax.jit, static_argnames=("num_head", "tm", "compute_dtype", "out_dtype")
)
def stm_forward(x, weights, *, num_head, tm=2048, compute_dtype=None, out_dtype=None):
    """x: (B, feature_dim, num_dim); weights: (num_head, num_dim, num_dim),
    weights[h] in nn.Linear convention (out_features, in_features).
    Returns (B, feature_dim, num_dim) in out_dtype (default: x.dtype)."""
    B, feature_dim, D = x.shape
    H = num_head
    if feature_dim % H != 0:
        raise ValueError(f"feature_dim={feature_dim} not divisible by num_head={H}")
    G = feature_dim // H

    x4 = x.reshape(B, H, G, D)  # free view (axis split), no HBM copy
    odt = jnp.dtype(out_dtype) if out_dtype is not None else x.dtype

    x_b = jnp.dtype(x.dtype).itemsize
    w_b = jnp.dtype(weights.dtype).itemsize
    o_b = jnp.dtype(odt).itemsize
    row_mult = 16 if x_b == 2 else 8  # bf16 packs 16 rows per sublane group

    # ---- tile selection: fat M tile (~tm rows) without any layout copies ----
    if G <= tm and G % 8 == 0:
        TG = G                                  # full group dim per step
        TB = max(1, min(B, tm // G))            # several batch entries per step
    elif G <= tm:
        TG = G                                  # unaligned G: full dim, 1 batch row
        TB = 1
    else:
        TB = 1
        TG = min(G, max(row_mult, (tm // row_mult) * row_mult))

    vmem_cap = _vmem_capacity_bytes()
    w_bytes = D * D * w_b

    # Single-buffer the weight only when double-buffering it would be a large
    # fraction of *physical* VMEM (v7x 64 MiB case); keep Buffered(2) on
    # 128 MiB parts so the next head's weight DMA stays hidden.
    w_spec_kwargs = {}
    w_bufs = 2
    if 2 * w_bytes > int(0.30 * vmem_cap):
        w_spec_kwargs["pipeline_mode"] = pl.Buffered(1)
        w_bufs = 1

    def _vmem_est(tb, tg):
        return (
            2 * tb * tg * D * x_b      # double-buffered x tiles
            + w_bufs * w_bytes         # weight buffer(s)
            + 2 * tb * tg * D * o_b    # double-buffered output tiles
        )

    budget = int(0.60 * vmem_cap)
    while _vmem_est(TB, TG) > budget:
        if TB > 1:
            TB = max(1, TB // 2)
        elif TG > row_mult:
            TG = max(row_mult, ((TG // 2) // row_mult) * row_mult)
        else:
            break

    nB = pl.cdiv(B, TB)
    nG = pl.cdiv(G, TG)
    grid = (H, nB, nG)  # head OUTERMOST -> weight block reused across inner axes

    vmem_limit = int(_vmem_est(TB, TG) * 1.25) + (2 << 20)
    vmem_limit = max(vmem_limit, 32 << 20)
    vmem_limit = min(vmem_limit, int(0.85 * vmem_cap))  # never exceed the part

    # Shard heads across megacore TCs; keep inner axes sequential per core so
    # the "weight fetched once per head" reuse is guaranteed.
    if H >= 2:
        dim_sem = ("parallel", "arbitrary", "arbitrary")
    else:
        dim_sem = ("arbitrary", "parallel", "parallel")

    cost = pl.CostEstimate(
        flops=2 * B * H * G * D * D,
        transcendentals=0,
        bytes_accessed=B * H * G * D * (x_b + o_b) + H * D * D * w_b,
    )

    kernel = functools.partial(_stm_kernel, compute_dtype=compute_dtype)

    out = pl.pallas_call(
        kernel,
        out_shape=jax.ShapeDtypeStruct((B, H, G, D), odt),
        grid_spec=pltpu.PrefetchScalarGridSpec(
            num_scalar_prefetch=0,
            grid=grid,
            in_specs=[
                pl.BlockSpec((TB, 1, TG, D), lambda h, ib, ig: (ib, h, ig, 0)),
                pl.BlockSpec(
                    (1, D, D),
                    lambda h, ib, ig: (h, 0, 0),  # constant on inner axes -> no re-DMA
                    **w_spec_kwargs,
                ),
            ],
            out_specs=pl.BlockSpec((TB, 1, TG, D), lambda h, ib, ig: (ib, h, ig, 0)),
        ),
        compiler_params=pltpu.CompilerParams(
            dimension_semantics=dim_sem,
            vmem_limit_bytes=vmem_limit,
        ),
        cost_estimate=cost,
    )(x4, weights)

    return out.reshape(B, feature_dim, D)  # free view (axis merge)


def init_stm_weights(key, num_dim, num_head):
    """Kaiming-normal (fan_out, relu): std = sqrt(2 / fan_out) = sqrt(2 / num_dim).
    Per-head weight shape follows nn.Linear: (out_features, in_features)."""
    std = (2.0 / num_dim) ** 0.5
    return jax.random.normal(key, (num_head, num_dim, num_dim), jnp.float32) * std


if __name__ == "__main__":
    # small, module-consistent shapes
    B = 2
    num_head = 4
    num_group = 8
    feature_dim = num_head * num_group  # 32
    num_dim = 32

    key = jax.random.PRNGKey(0)
    kx, kw = jax.random.split(key)
    x = jax.random.normal(kx, (B, feature_dim, num_dim), jnp.float32)
    weights = init_stm_weights(kw, num_dim, num_head)

    y = stm_forward(x, weights, num_head=num_head)
    y = jax.block_until_ready(y)

    # pure-JAX reference: same math as the PyTorch per-head loop (y_h = x_h @ W_h^T).
    x4 = x.reshape(B, num_head, num_group, num_dim)
    y_ref = jnp.einsum(
        "bhgk,hnk->bhgn", x4, weights, preferred_element_type=jnp.float32
    ).astype(x.dtype).reshape(B, feature_dim, num_dim)

    assert y.shape == (B, feature_dim, num_dim)
    max_err = float(jnp.max(jnp.abs(y - y_ref)))
    assert jnp.allclose(y, y_ref, atol=2e-2, rtol=2e-2), max_err

    print("KERNEL_OK")
</pallas_src>

<mosaic_0001>
module attributes {stable_mosaic.version = 11 : i64} {
  func.func @_stm_kernel(%arg0: i32, %arg1: i32, %arg2: i32, %arg3: memref<2x1x8x32xf32, #tpu.memory_space<vmem>>, %arg4: memref<1x32x32xf32, #tpu.memory_space<vmem>>, %arg5: memref<2x1x8x32xf32, #tpu.memory_space<vmem>>) attributes {dimension_semantics = [#tpu.dimension_semantics<parallel>, #tpu.dimension_semantics<arbitrary>, #tpu.dimension_semantics<arbitrary>], iteration_bounds = array<i64: 4, 1, 1>, scalar_prefetch = 0 : i64, scratch_operands = 0 : i64, tpu.core_type = #tpu.core_type<tc>, window_params = [{transform_indices = @transform_0, window_bounds = array<i64: 2, 1, 8, 32>}, {transform_indices = @transform_1, window_bounds = array<i64: 1, 32, 32>}, {transform_indices = @transform_2, window_bounds = array<i64: 2, 1, 8, 32>}]} {
    %c0 = arith.constant 0 : index
    %c0_0 = arith.constant 0 : index
    %c0_1 = arith.constant 0 : index
    %c0_2 = arith.constant 0 : index
    %0 = vector.load %arg3[%c0, %c0_0, %c0_1, %c0_2] : memref<2x1x8x32xf32, #tpu.memory_space<vmem>>, vector<2x1x8x32xf32>
    %1 = vector.shape_cast %0 : vector<2x1x8x32xf32> to vector<16x32xf32>
    %c0_3 = arith.constant 0 : index
    %c0_4 = arith.constant 0 : index
    %c0_5 = arith.constant 0 : index
    %2 = vector.load %arg4[%c0_3, %c0_4, %c0_5] : memref<1x32x32xf32, #tpu.memory_space<vmem>>, vector<1x32x32xf32>
    %3 = vector.shape_cast %2 : vector<1x32x32xf32> to vector<32x32xf32>
    %cst = arith.constant dense<0.000000e+00> : vector<16x32xf32>
    %4 = tpu.matmul %1, %3, %cst {dimension_numbers = #tpu.dot_dimension_numbers<[1], [1], [0], [0], [0, 0, 1, 0], [], []>} : vector<16x32xf32>, vector<32x32xf32>, vector<16x32xf32> -> vector<16x32xf32>
    %5 = vector.shape_cast %4 : vector<16x32xf32> to vector<2x1x8x32xf32>
    %c0_6 = arith.constant 0 : index
    %c0_7 = arith.constant 0 : index
    %c0_8 = arith.constant 0 : index
    %c0_9 = arith.constant 0 : index
    %6 = vector.load %arg5[%c0_6, %c0_7, %c0_8, %c0_9] : memref<2x1x8x32xf32, #tpu.memory_space<vmem>>, vector<2x1x8x32xf32>
    tpu.vector_store %arg5[%c0_6, %c0_7, %c0_8, %c0_9], %5 {strides = array<i32>} : memref<2x1x8x32xf32, #tpu.memory_space<vmem>>, vector<2x1x8x32xf32>,
    return
  }
  func.func @transform_0(%arg0: i32, %arg1: i32, %arg2: i32) -> (i32, i32, i32, i32) {
    %c0_i32 = arith.constant 0 : i32
    %c0_i32_0 = arith.constant 0 : i32
    return %arg1, %arg0, %arg2, %c0_i32 : i32, i32, i32, i32
  }
  func.func @transform_1(%arg0: i32, %arg1: i32, %arg2: i32) -> (i32, i32, i32) {
    %c0_i32 = arith.constant 0 : i32
    %c0_i32_0 = arith.constant 0 : i32
    %c0_i32_1 = arith.constant 0 : i32
    return %arg0, %c0_i32, %c0_i32_0 : i32, i32, i32
  }
  func.func @transform_2(%arg0: i32, %arg1: i32, %arg2: i32) -> (i32, i32, i32, i32) {
    %c0_i32 = arith.constant 0 : i32
    %c0_i32_0 = arith.constant 0 : i32
    return %arg1, %arg0, %arg2, %c0_i32 : i32, i32, i32, i32
  }
}

</mosaic_0001>

<bundles_post_ra>
// kernel: stm_forward.1
= control target key start
LH: loop header
LB: loop body
LE: loop exit
PB: predicated region body
PF: predicated region fallthrough
CT: control target
= control target key end

     0   :  { %7 = vsyncpa [#allocation3], 0  ;;  %s996_s0 = inlined_call_operand.hbm [shape: f32[2,4,8,32], index: 0, kind: input, shape index: {}]   ;;  %s997_s1 = inlined_call_operand.hbm [shape: f32[4,32,32], index: 1, kind: input, shape index: {}]   ;;  %s998_s2 = inlined_call_operand.hbm [shape: f32[2,4,8,32], index: 2, kind: output, shape index: {}]  }
   0x1   :  { %9 = vsyncpa [#allocation3 + $0x1], 0 }
   0x2   :  { %10 = vsyncpa [#allocation6], 0 }
   0x3   :  { %12 = vsyncpa [#allocation6 + $0x1], 0 }
   0x4   :  { %13 = vsyncpa [#allocation4], 0 }
   0x5   :  { %15 = vsyncpa [#allocation4 + $0x1], 0  ;;  %s764_s9 = smov 0   ;;  %s766_s10 = smov 0  }
   0x6   :  { %s768_s11 = smov 0   ;;  %s770_s12 = smov 0  }
   0x7   :  { %s772_s13 = smov 0   ;;  %s774_s14 = smov 0  }
   0x8 LB: > { %s466_s15 = sadd.s32 4294967295, %s738_s14   ;;  %s467_s16 = sadd.s32 4294967294, %s738_s14   ;;  %s738_s14 = sphi %s774_s14, %s21_s14   ;;  %s734_s13 = sphi %s772_s13, %s1014_s13   ;;  %s730_s12 = sphi %s770_s12, %s1013_s12   ;;  %s726_s11 = sphi %s768_s11, %s1012_s11   ;;  %s722_s10 = sphi %s766_s10, %s1011_s10   ;;  %s718_s9 = sphi %s764_s9, %s1010_s9  }
   0x9   : > { %s40_s17 = sadd.s32 1, %s734_s13  ;;  %s51_s18 = sadd.s32 1, %s726_s11 }
   0xa   : > { %p42_p0 = scmp.ge.s32.totalorder %s40_s17, 4  ;;  %p58_p1 = scmp.ne.s32.totalorder %s726_s11, %s722_s10 }
   0xb   : > { %p59_p2 = scmp.eq.s32.totalorder %s738_s14, 0  ;;  %p64_p3 = scmp.ne.s32.totalorder %s722_s10, %s718_s9 }
   0xc   : > { %s1016_s17 = smov (%p42_p0, %s40_s17), 0  ;;  %p65_p5 = scmp.eq.s32.totalorder %s466_s15, 0 }
   0xd   : > { %p805_p4 = por %p59_p2, %p58_p1  ;;  %s45_s20 = ssub.s32 %s734_s13, %s1016_s17 }
   0xe   : > { %p118_p6 = scmp.eq.s32.totalorder %s466_s15, 3  ;;  %p49_p7 = scmp.eq.s32.totalorder %s45_s20, 0 }
   0xf   : > { %p811_p8 = por %p65_p5, %p64_p3  ;;  %p124_p10 = scmp.eq.s32.totalorder %s467_s16, 3 }
  0x10   : > { %p815_p9 = por %p118_p6, %p58_p1  ;;  %p536_p12 = scmp.lt.s32.totalorder %s738_s14, 4 }
  0x11   : > { %s1002_s21 = scalar_select %p811_p8, 1, 0 }
  0x12   : > { %s1003_s22 = scalar_select %p815_p9, 1, 0 }
  0x13   : > { %s820_s23 = scalar_select %p49_p7, %s726_s11, %s51_s18  }
  0x14   : > { %p822_p11 = por %p124_p10, %p64_p3  ;;  %s828_s25 = sand.u32 1, %s726_s11  }
  0x15   : > { %s470_s26 = sshll.u32 %s828_s25, 4  ;;  %s471_s27 = sshll.u32 %s734_s13, 7 }
  0x16   : > { %s1004_s24 = scalar_select %p822_p11, 1, 0 }
  0x17   : > { %s835_s30 = scalar_lea.hbm %s996_s0, %s471_s27  ;;  %s148_s3 = scalar_lea.vmem [#allocation2], %s470_s26 }
  0x18   : > { %s158_s4 = sshll.u32 %s148_s3, 4  ;;  %p841_p13 = pnand %p536_p12, %p805_p4  ;;  %s837_s4 = int_to_ptr.vmem [resolvable:$true] %s158_s4 }
  0x19   : > { %s145_s6 = scalar_lea.sflag [#allocation3], %s828_s25  ;;  %s592_s7 = scalar_lea.hbm %s835_s30, 256 }
  0x1a   : > { %p593_p0 = scmp.ne.s32.totalorder %s835_s30, %s592_s7  ;;  %p594_p1 = pneg %p841_p13 }
  0x1b   : > { %s597_s16 = scalar_lea.hbm %s996_s0, 1024  ;;  %p598_p4 = scmp.lt.u32.totalorder %s835_s30, %s996_s0 }
  0x1c   : > { %p595_p2 = pnand %p594_p1, %p593_p0  ;;  %p599_p5 = scmp.lt.u32.totalorder %s597_s16, %s592_s7 }
  0x1d   : > { %p601_p7 = scmp.lt.u32.totalorder %s592_s7, %s835_s30 }
  0x1e   : > { %p596_p3 = pneg %p595_p2  ;;  %p600_p6 = por %p599_p5, %p598_p4 }
  0x20   : > { %p602_p10 = por %p601_p7, %p600_p6 }
  0x22   : > { %p603_p12 = pnand %p602_p10, %p596_p3 }
  0x24   : > { %606 = shalt.err (!%p603_p12)
}
  0x25   : > { %s607_s20 = scalar_lea.vmem %s837_s4, 256  ;;  %s740_s26 = smov [#allocation2]  }
  0x26   : > { %p608_p0 = scmp.ne.s32.totalorder %s837_s4, %s607_s20  ;;  %s612_s27 = sshll.u32 %s740_s26, 4  ;;  %s613_s27 = int_to_ptr.vmem [resolvable:$false] %s612_s27 }
  0x27   : > { %s614_s28 = scalar_lea.vmem %s613_s27, 512  ;;  %p615_p9 = scmp.lt.s32.totalorder %s837_s4, %s613_s27 }
  0x28   : > { %p610_p2 = pnand %p608_p0, %p594_p1  ;;  %p616_p4 = scmp.lt.s32.totalorder %s614_s28, %s607_s20 }
  0x2a   : > { %p611_p11 = pneg %p610_p2  ;;  %p617_p5 = por %p616_p4, %p615_p9 }
  0x2c   : > { %p618_p6 = pnand %p617_p5, %p611_p11 }
  0x2e   : > { %621 = shalt.err (!%p618_p6)
}
  0x2f   : > { %s741_s29 = smov 512   ;;  %s742_s3 = smov 128  }
  0x30   : > { %s743_s7 = smov 8   ;;  %p475_p9 = scmp.ge.s32.totalorder %s738_s14, 1 }
  0x31   : > { %528 = dma.hbm_to_vmem [thread:$0]  (!%p841_p13), %s835_s30, 256, %s837_s4, %s145_s6, %s741_s29, %s742_s3, %s743_s7  }
  0x32   : > { %p187_p11 = scmp.lt.s32.totalorder %s738_s14, 5  ;;  %s472_s8 = sshll.u32 %s828_s25, 5 }
  0x33   : > { %s489_s16 = sshll.u32 %s734_s13, 9  ;;  %s172_s18 = scalar_lea.vmem [#allocation5], %s472_s8 }
  0x34   : > { %p878_p3 = pnand %p475_p9, %p187_p11  ;;  %s179_s19 = sshll.u32 %s172_s18, 4  ;;  %s888_s19 = int_to_ptr.vmem [resolvable:$true] %s179_s19 }
  0x35   : > { %s886_s27 = scalar_lea.hbm %s997_s1, %s489_s16  ;;  %s169_s30 = scalar_lea.sflag [#allocation6], %s828_s25 }
  0x36   : > { %s622_s4 = scalar_lea.hbm %s886_s27, 512  ;;  %s627_s29 = scalar_lea.hbm %s997_s1, 2048 }
  0x37   : > { %p623_p7 = scmp.ne.s32.totalorder %s886_s27, %s622_s4  ;;  %p628_p0 = scmp.lt.u32.totalorder %s886_s27, %s997_s1 }
  0x38   : > { %p629_p2 = scmp.lt.u32.totalorder %s627_s29, %s622_s4  ;;  %p631_p5 = scmp.lt.u32.totalorder %s622_s4, %s886_s27 }
  0x39   : > { %p625_p10 = pnand %p623_p7, %p594_p1 }
  0x3a   : > { %p630_p4 = por %p629_p2, %p628_p0 }
  0x3b   : > { %p626_p12 = pneg %p625_p10 }
  0x3c   : > { %p632_p6 = por %p631_p5, %p630_p4 }
  0x3e   : > { %p633_p9 = pnand %p632_p6, %p626_p12 }
  0x40   : > { %636 = shalt.err (!%p633_p9)
}
  0x41   : > { %s637_s18 = scalar_lea.vmem %s888_s19, 512  ;;  %s744_s20 = smov [#allocation5]  }
  0x42   : > { %p638_p11 = scmp.ne.s32.totalorder %s888_s19, %s637_s18  ;;  %s642_s26 = sshll.u32 %s744_s20, 4  ;;  %s643_s26 = int_to_ptr.vmem [resolvable:$false] %s642_s26 }
  0x43   : > { %s644_s6 = scalar_lea.vmem %s643_s26, 1024  ;;  %p645_p8 = scmp.lt.s32.totalorder %s888_s19, %s643_s26 }
  0x44   : > { %p640_p7 = pnand %p638_p11, %p594_p1  ;;  %p646_p0 = scmp.lt.s32.totalorder %s644_s6, %s637_s18 }
  0x46   : > { %p641_p10 = pneg %p640_p7  ;;  %p647_p2 = por %p646_p0, %p645_p8 }
  0x48   : > { %p648_p4 = pnand %p647_p2, %p641_p10 }
  0x4a   : > { %651 = shalt.err (!%p648_p4)
}
  0x4b   : > { %531 = dma.hbm_to_vmem [thread:$0]  (!%p841_p13), %s886_s27, 512, %s888_s19, %s169_s30, %s742_s3, %s742_s3, %s743_s7  }
  0x4c   : > { %191 = sbr.rel (%p878_p3) target bundleno = 335 (0x14f), region = 28  ;;  %s922_s4 = sand.u32 (!%p878_p3), 1, %s722_s10  }
  0x4d   : > { %s476_s28 = sshll.u32 (!%p878_p3), %s922_s4, 4  ;;  %s194_s29 = scalar_lea.sflag (!%p878_p3), [#allocation3], %s922_s4 }
  0x4e   : > { %s197_s5 = scalar_lea.vmem (!%p878_p3), [#allocation2], %s476_s28  ;;  %p1007_p8 = scmp.ne.s32.totalorder (!%p878_p3), %s1002_s21, 0 }
  0x53   : > { %705 = dma.done.wait (%p1007_p8), %s194_s29, 256  }
  0x54   : > { %707 = vsyncadd (%p1007_p8), %s194_s29, 4294967040  ;;  %s477_s25 = sshll.u32 %s922_s4, 5  ;;  %s203_s3 = scalar_lea.sflag [#allocation6], %s922_s4 }
  0x55   : > { %s206_s7 = scalar_lea.vmem [#allocation5], %s477_s25 }
  0x56   : > { %709 = dma.done.wait (%p1007_p8), %s203_s3, 512  }
  0x57   : > { %711 = vsyncadd (%p1007_p8), %s203_s3, 4294966784  ;;  %vm240_vm0 = vcmask 261120   ;;  %v236_v0 = vld [vmem:[%s206_s7] sm:$0xff]  ;;  %v237_v1 = vld [vmem:[%s206_s7 + $0x8] sm:$0xff]  ;;  %s231_s21 = scalar_lea.vmem [#allocation7], %s476_s28  ;;  %s486_s19 = sshll.u32 %s730_s12, 7 }
  0x58   : > { %vm508_vm1 = vmpackc.low %vm240_vm0, %vm240_vm0  ;;  %v238_v2 = vld [vmem:[%s206_s7 + $0x10] sm:$0xff]  ;;  %v507_v3 = vpack.c.bf16 %v237_v1, %v236_v0  ;;  %v239_v4 = vld [vmem:[%s206_s7 + $0x18] sm:$0xff]  ;;  %s353_s15 = sshll.u32 %s231_s21, 4  ;;  %s946_s8 = scalar_lea.hbm %s998_s2, %s486_s19  ;;  %s941_s15 = int_to_ptr.vmem [resolvable:$true] %s353_s15 }
  0x59   : > { %v234_v5 = vld [vmem:[%s197_s5] sm:$0xff]  ;;  %v513_v6 = vpack.c.bf16 %v239_v4, %v238_v2  ;;  %v235_v7 = vld [vmem:[%s197_s5 + $0x8] sm:$0xff]  ;;  %s337_s16 = scalar_lea.sflag [#allocation4], %s922_s4  ;;  %s652_s18 = scalar_lea.vmem %s941_s15, 256 }
  0x5a   : > { %504 = vmatprep.mubr.msk.f32.mxu0 %vm240_vm0, %v234_v5  ;;  %509 = vmatprep.subr.msk.bf16.mxu0 %vm508_vm1, %v507_v3  ;;  %p653_p13 = scmp.ne.s32.totalorder %s941_s15, %s652_s18  ;;  %p1008_p1 = scmp.ne.s32.totalorder %s1003_s22, 0 }
  0x5b   : > { %512 = vmatpush3.bf16.xpose.msk.msra.mxu0 %vm508_vm1, %v507_v3  ;;  %s745_s12 = smov [#allocation7]  }
  0x5c   : > { %515 = vmatprep.subr.msk.bf16.mxu0 %vm508_vm1, %v513_v6  ;;  %p654_p3 = pnand %p653_p13, %p1008_p1  ;;  %s656_s20 = sshll.u32 %s745_s12, 4  ;;  %s657_s20 = int_to_ptr.vmem [resolvable:$false] %s656_s20 }
  0x5d   : > { %s658_s26 = scalar_lea.vmem %s657_s20, 512  ;;  %p659_p5 = scmp.lt.s32.totalorder %s941_s15, %s657_s20 }
  0x5e   : > { %p655_p12 = pneg %p654_p3  ;;  %p660_p6 = scmp.lt.s32.totalorder %s658_s26, %s652_s18 }
  0x60   : > { %p661_p9 = por %p660_p6, %p659_p5 }
  0x62   : > { %p662_p11 = pnand %p661_p9, %p655_p12 }
  0x63   : > { %518 = vmatpush3.bf16.xpose.msk.msra.mxu0 %vm508_vm1, %v513_v6 }
  0x6a   : > { %505 = vmatmul.mubr.msk.f32.vlgmr.msra.gmra.mrb[0].mxu0 %vm240_vm0, %v235_v7 }
 0x13d   : > { %v506_v8 = vpop.f32.mrb[0].mxu0 }
 0x13e   : > { %335 = vst.msk [vmem:[%s231_s21 + $0x8] sm:$0xff] %vm240_vm0, %v506_v8  ;;  %v325_v9 = vpop.f32.mrb[1].mxu0 }
 0x13f   : > { %334 = vst.msk [vmem:[%s231_s21] sm:$0xff] %vm240_vm0, %v325_v9 }
 0x140   : > { %665 = shalt.err (!%p662_p11)
}
 0x141   : > { %s666_s6 = scalar_lea.hbm %s946_s8, 256  ;;  %s670_s5 = scalar_lea.hbm %s998_s2, 1024 }
 0x142   : > { %p667_p7 = scmp.ne.s32.totalorder %s946_s8, %s666_s6  ;;  %p671_p2 = scmp.lt.u32.totalorder %s946_s8, %s998_s2 }
 0x143   : > { %p672_p4 = scmp.lt.u32.totalorder %s670_s5, %s666_s6  ;;  %p674_p13 = scmp.lt.u32.totalorder %s666_s6, %s946_s8 }
 0x144   : > { %p668_p10 = pnand %p667_p7, %p1008_p1 }
 0x145   : > { %p673_p8 = por %p672_p4, %p671_p2 }
 0x146   : > { %p669_p0 = pneg %p668_p10 }
 0x147   : > { %p675_p3 = por %p674_p13, %p673_p8 }
 0x149   : > { %p676_p12 = pnand %p675_p3, %p669_p0 }
 0x14b   : > { %679 = shalt.err (!%p676_p12)
}
 0x14c   : > { %s746_s7 = smov 128   ;;  %s747_s21 = smov 512  }
 0x14d   : > { %s748_s19 = smov 8  }
 0x14e   : > { %523 = dma.vmem_to_hbm [thread:$0]  (%p1008_p1), %s941_s15, 256, %s946_s8, %s337_s16, %s746_s7, %s747_s21, %s748_s19  }
 0x14f PF: > { %p537_p5 = scmp.ge.s32.totalorder %s738_s14, 2  ;;  %s368_s27 = sand.u32 1, %s718_s9  }
 0x150   : > { %p1009_p6 = scmp.ne.s32.totalorder %s1004_s24, 0  ;;  %s369_s30 = scalar_lea.sflag [#allocation4], %s368_s27 }
 0x152   : > { %p533_p9 = pnand %p537_p5, %p1009_p6 }
 0x154   : > { %713 = dma.done.wait (!%p533_p9), %s369_s30, 256  }
 0x155   : > { %715 = vsyncadd (!%p533_p9), %s369_s30, 4294967040  ;;  %s21_s14 = sadd.s32 1, %s738_s14   ;;  %s1010_s9 = smov %s722_s10 }
 0x156   : > { %p18_p11 = scmp.ge.s32.totalorder %s21_s14, 6   ;;  %s1011_s10 = smov %s726_s11 }
 0x157   : > { %s1012_s11 = smov %s820_s23  ;;  %s1013_s12 = smov %s734_s13 }
 0x158   : > { %s1014_s13 = smov %s1016_s17  ;;  %20 = sbr.rel (!%p18_p11) target bundleno = 8 (0x8), region = 86 }
 0x15f   :  { %374 = vsyncpa [#allocation3], 1 }
 0x160   :  { %376 = vsyncpa [#allocation3 + $0x1], 1 }
 0x161   :  { %377 = vsyncpa [#allocation6], 1 }
 0x162   :  { %379 = vsyncpa [#allocation6 + $0x1], 1 }
 0x163   :  { %380 = vsyncpa [#allocation4], 1 }
 0x164   :  { %382 = vsyncpa [#allocation4 + $0x1], 1 }

</bundles_post_ra>
